<compile_context>
chip_gen: v6e
topology: v6e:2x2x1
jax: 0.10.0
libtpu: 0.0.40
codegen_flags: <defaults>
</compile_context>

<pallas_src>
import jax
import jax.numpy as jnp
from jax.experimental import pallas as pl
from jax.experimental.pallas import tpu as pltpu

_MAX_TB = 2048  # batch tile: multiple of 8, sized well inside scoped VMEM on all gens


def _round_up(x, m):
    return ((x + m - 1) // m) * m


def _discriminator_kernel(x_ref, w1_ref, b1_ref, w2_ref, b2_ref, w3_ref, b3_ref,
                          o_ref):
    x = x_ref[...]                                              # (TB, 2) f32

    # Layer 1: Linear(2, 128) as two broadcast-mul-adds on the VPU
    # (K=2 is far too shallow to pay for an MXU pass), then LeakyReLU(0.2).
    h1 = (x[:, 0:1] * w1_ref[0:1, :]
          + x[:, 1:2] * w1_ref[1:2, :]
          + b1_ref[...])                                        # (TB, 128) f32
    h1 = jnp.where(h1 > 0, h1, 0.2 * h1)

    # Layer 2: Linear(128, 256) on the MXU, bf16 operands + f32 accumulate,
    # then LeakyReLU(0.2).
    h2 = jnp.dot(h1.astype(jnp.bfloat16), w2_ref[...],
                 preferred_element_type=jnp.float32) + b2_ref[...]  # (TB, 256)
    h2 = jnp.where(h2 > 0, h2, 0.2 * h2)

    # Layer 3: Linear(256, 1) as VPU mul + XLU lane reduction (N=1 would waste
    # the MXU; w3 is stored lane-dense as (1, 256)), then Sigmoid via EUP.
    z = jnp.sum(h2 * w3_ref[...], axis=-1, keepdims=True) + b3_ref[...]  # (TB, 1)
    o_ref[...] = pl.reciprocal(1.0 + jnp.exp(-z), approx=True)


def discriminator_forward(img, params):
    """img: (B, ...) with prod(...) == 2. Returns validity of shape (B, 1)."""
    B = img.shape[0]
    x = img.reshape(B, -1).astype(jnp.float32)                  # img.view(B, -1)
    assert x.shape[1] == 2, "Discriminator expects 2 input features after flatten"
    w1, b1, w2, b2, w3, b3 = params

    # Batch tile: multiple of 8, capped so per-step intermediates
    # (TB x 256 f32 ~ 2 MiB at TB=2048) stay tiny vs. scoped VMEM on all gens.
    tb = min(_MAX_TB, _round_up(B, 8))
    Bp = _round_up(B, tb)
    if Bp != B:
        x = jnp.pad(x, ((0, Bp - B), (0, 0)))

    const2d = lambda i: (0, 0)
    out = pl.pallas_call(
        _discriminator_kernel,
        out_shape=jax.ShapeDtypeStruct((Bp, 1), jnp.float32),
        grid=(pl.cdiv(Bp, tb),),
        in_specs=[
            pl.BlockSpec((tb, 2), lambda i: (i, 0)),     # x: batch-tiled
            pl.BlockSpec((2, 128), const2d),             # w1 (resident)
            pl.BlockSpec((1, 128), const2d),             # b1
            pl.BlockSpec((128, 256), const2d),           # w2 (bf16, resident)
            pl.BlockSpec((1, 256), const2d),             # b2
            pl.BlockSpec((1, 256), const2d),             # w3 (lane-dense)
            pl.BlockSpec((1, 1), const2d),               # b3
        ],
        out_specs=pl.BlockSpec((tb, 1), lambda i: (i, 0)),
        compiler_params=pltpu.CompilerParams(
            dimension_semantics=("parallel",)),          # shard batch across TCs (v7x)
    )(x, w1, b1, w2.astype(jnp.bfloat16), b2, w3, b3)
    return out[:B]


def init_params(key):
    """Deterministic torch-style init. w* stored as (in, out); w3 lane-dense (1, 256)."""
    ks = jax.random.split(key, 6)

    def lin(kw, kb, fan_in, fan_out):
        bound = 1.0 / jnp.sqrt(jnp.float32(fan_in))
        w = jax.random.uniform(kw, (fan_in, fan_out), jnp.float32, -bound, bound)
        b = jax.random.uniform(kb, (1, fan_out), jnp.float32, -bound, bound)
        return w, b

    w1, b1 = lin(ks[0], ks[1], 2, 128)
    w2, b2 = lin(ks[2], ks[3], 128, 256)
    w3_col, b3 = lin(ks[4], ks[5], 256, 1)
    w3 = w3_col.T                                   # (1, 256) lane-dense layout
    return (w1, b1, w2, b2, w3, b3)


def _reference_forward(img, params):
    """Plain-JAX f32 reference for a correctness check."""
    w1, b1, w2, b2, w3, b3 = params
    x = img.reshape(img.shape[0], -1).astype(jnp.float32)
    h = x @ w1 + b1
    h = jnp.where(h > 0, h, 0.2 * h)
    h = h @ w2 + b2
    h = jnp.where(h > 0, h, 0.2 * h)
    z = h @ w3.T + b3
    return jax.nn.sigmoid(z)


if __name__ == "__main__":
    key = jax.random.PRNGKey(0)
    k_img, k_params = jax.random.split(key)

    params = init_params(k_params)

    # "2D point" input, matching Linear(2, ...) after view(B, -1).
    B = 8
    img = jax.random.normal(k_img, (B, 2), dtype=jnp.float32)
    out = jax.block_until_ready(discriminator_forward(img, params))
    ref = _reference_forward(img, params)
    assert out.shape == (B, 1)
    # bf16 middle matmul + approx reciprocal -> loosened tolerance vs f32 reference.
    assert jnp.allclose(out, ref, atol=1e-2, rtol=1e-2)

    # Exercise the padding path (B not a multiple of the 8-row tile).
    B2 = 6
    img2 = jax.random.normal(jax.random.PRNGKey(1), (B2, 2), dtype=jnp.float32)
    out2 = jax.block_until_ready(discriminator_forward(img2, params))
    ref2 = _reference_forward(img2, params)
    assert out2.shape == (B2, 1)
    assert jnp.allclose(out2, ref2, atol=1e-2, rtol=1e-2)

    print("KERNEL_OK")
</pallas_src>

<mosaic_0001>
module attributes {stable_mosaic.version = 11 : i64} {
  func.func @_discriminator_kernel(%arg0: i32, %arg1: memref<8x2xf32, #tpu.memory_space<vmem>>, %arg2: memref<2x128xf32, #tpu.memory_space<vmem>>, %arg3: memref<1x128xf32, #tpu.memory_space<vmem>>, %arg4: memref<128x256xbf16, #tpu.memory_space<vmem>>, %arg5: memref<1x256xf32, #tpu.memory_space<vmem>>, %arg6: memref<1x256xf32, #tpu.memory_space<vmem>>, %arg7: memref<1x1xf32, #tpu.memory_space<vmem>>, %arg8: memref<8x1xf32, #tpu.memory_space<vmem>>) attributes {dimension_semantics = [#tpu.dimension_semantics<parallel>], iteration_bounds = array<i64: 1>, scalar_prefetch = 0 : i64, scratch_operands = 0 : i64, tpu.core_type = #tpu.core_type<tc>, window_params = [{transform_indices = @transform_0, window_bounds = array<i64: 8, 2>}, {pipeline_mode = #tpu.pipeline_mode<synchronous>, transform_indices = @transform_1, window_bounds = array<i64: 2, 128>}, {pipeline_mode = #tpu.pipeline_mode<synchronous>, transform_indices = @transform_2, window_bounds = array<i64: 1, 128>}, {pipeline_mode = #tpu.pipeline_mode<synchronous>, transform_indices = @transform_3, window_bounds = array<i64: 128, 256>}, {pipeline_mode = #tpu.pipeline_mode<synchronous>, transform_indices = @transform_4, window_bounds = array<i64: 1, 256>}, {pipeline_mode = #tpu.pipeline_mode<synchronous>, transform_indices = @transform_5, window_bounds = array<i64: 1, 256>}, {pipeline_mode = #tpu.pipeline_mode<synchronous>, transform_indices = @transform_6, window_bounds = array<i64: 1, 1>}, {transform_indices = @transform_7, window_bounds = array<i64: 8, 1>}]} {
    %c0 = arith.constant 0 : index
    %c0_0 = arith.constant 0 : index
    %0 = vector.load %arg1[%c0, %c0_0] : memref<8x2xf32, #tpu.memory_space<vmem>>, vector<8x2xf32>
    %1 = vector.extract_strided_slice %0 {offsets = [0, 0], sizes = [8, 1], strides = [1, 1]} : vector<8x2xf32> to vector<8x1xf32>
    %c0_1 = arith.constant 0 : index
    %c0_2 = arith.constant 0 : index
    %2 = vector.load %arg2[%c0_1, %c0_2] : memref<2x128xf32, #tpu.memory_space<vmem>>, vector<1x128xf32>
    %3 = vector.broadcast %1 : vector<8x1xf32> to vector<8x128xf32>
    %4 = vector.broadcast %2 : vector<1x128xf32> to vector<8x128xf32>
    %5 = arith.mulf %3, %4 : vector<8x128xf32>
    %6 = vector.extract_strided_slice %0 {offsets = [0, 1], sizes = [8, 1], strides = [1, 1]} : vector<8x2xf32> to vector<8x1xf32>
    %c1 = arith.constant 1 : index
    %c0_3 = arith.constant 0 : index
    %7 = vector.load %arg2[%c1, %c0_3] : memref<2x128xf32, #tpu.memory_space<vmem>>, vector<1x128xf32>
    %8 = vector.broadcast %6 : vector<8x1xf32> to vector<8x128xf32>
    %9 = vector.broadcast %7 : vector<1x128xf32> to vector<8x128xf32>
    %10 = arith.mulf %8, %9 : vector<8x128xf32>
    %11 = arith.addf %5, %10 : vector<8x128xf32>
    %c0_4 = arith.constant 0 : index
    %c0_5 = arith.constant 0 : index
    %12 = vector.load %arg3[%c0_4, %c0_5] : memref<1x128xf32, #tpu.memory_space<vmem>>, vector<1x128xf32>
    %13 = vector.broadcast %12 : vector<1x128xf32> to vector<8x128xf32>
    %14 = arith.addf %11, %13 : vector<8x128xf32>
    %cst = arith.constant 0.000000e+00 : f32
    %15 = vector.broadcast %cst : f32 to vector<8x128xf32>
    %16 = arith.cmpf ogt, %14, %15 : vector<8x128xf32>
    %cst_6 = arith.constant 2.000000e-01 : f32
    %17 = vector.broadcast %cst_6 : f32 to vector<8x128xf32>
    %18 = arith.mulf %17, %14 : vector<8x128xf32>
    %19 = arith.select %16, %14, %18 : vector<8x128xi1>, vector<8x128xf32>
    %20 = arith.truncf %19 : vector<8x128xf32> to vector<8x128xbf16>
    %c0_7 = arith.constant 0 : index
    %c0_8 = arith.constant 0 : index
    %21 = vector.load %arg4[%c0_7, %c0_8] : memref<128x256xbf16, #tpu.memory_space<vmem>>, vector<128x256xbf16>
    %cst_9 = arith.constant dense<0.000000e+00> : vector<8x256xf32>
    %22 = tpu.matmul %20, %21, %cst_9 {dimension_numbers = #tpu.dot_dimension_numbers<[1], [0], [0], [1], [0, 0, 1, 1], [], []>} : vector<8x128xbf16>, vector<128x256xbf16>, vector<8x256xf32> -> vector<8x256xf32>
    %c0_10 = arith.constant 0 : index
    %c0_11 = arith.constant 0 : index
    %23 = vector.load %arg5[%c0_10, %c0_11] : memref<1x256xf32, #tpu.memory_space<vmem>>, vector<1x256xf32>
    %24 = vector.broadcast %23 : vector<1x256xf32> to vector<8x256xf32>
    %25 = arith.addf %22, %24 : vector<8x256xf32>
    %cst_12 = arith.constant 0.000000e+00 : f32
    %26 = vector.broadcast %cst_12 : f32 to vector<8x256xf32>
    %27 = arith.cmpf ogt, %25, %26 : vector<8x256xf32>
    %cst_13 = arith.constant 2.000000e-01 : f32
    %28 = vector.broadcast %cst_13 : f32 to vector<8x256xf32>
    %29 = arith.mulf %28, %25 : vector<8x256xf32>
    %30 = arith.select %27, %25, %29 : vector<8x256xi1>, vector<8x256xf32>
    %c0_14 = arith.constant 0 : index
    %c0_15 = arith.constant 0 : index
    %31 = vector.load %arg6[%c0_14, %c0_15] : memref<1x256xf32, #tpu.memory_space<vmem>>, vector<1x256xf32>
    %32 = vector.broadcast %31 : vector<1x256xf32> to vector<8x256xf32>
    %33 = arith.mulf %30, %32 : vector<8x256xf32>
    %cst_16 = arith.constant dense<0.000000e+00> : vector<8xf32>
    %34 = vector.multi_reduction <add>, %33, %cst_16 [1] : vector<8x256xf32> to vector<8xf32>
    %35 = vector.shape_cast %34 : vector<8xf32> to vector<8x1xf32>
    %c0_17 = arith.constant 0 : index
    %c0_18 = arith.constant 0 : index
    %36 = vector.load %arg7[%c0_17, %c0_18] : memref<1x1xf32, #tpu.memory_space<vmem>>, vector<1x1xf32>
    %37 = vector.broadcast %36 : vector<1x1xf32> to vector<8x1xf32>
    %38 = arith.addf %35, %37 : vector<8x1xf32>
    %cst_19 = arith.constant 0.000000e+00 : f32
    %39 = vector.broadcast %cst_19 : f32 to vector<8x1xf32>
    %40 = arith.subf %39, %38 : vector<8x1xf32>
    %41 = math.exp %40 : vector<8x1xf32>
    %cst_20 = arith.constant 1.000000e+00 : f32
    %42 = vector.broadcast %cst_20 : f32 to vector<8x1xf32>
    %43 = arith.addf %42, %41 : vector<8x1xf32>
    %44 = tpu.reciprocal %43 {approx = true} : vector<8x1xf32> -> vector<8x1xf32>
    %c0_21 = arith.constant 0 : index
    %c0_22 = arith.constant 0 : index
    %45 = vector.load %arg8[%c0_21, %c0_22] : memref<8x1xf32, #tpu.memory_space<vmem>>, vector<8x1xf32>
    tpu.vector_store %arg8[%c0_21, %c0_22], %44 {strides = array<i32>} : memref<8x1xf32, #tpu.memory_space<vmem>>, vector<8x1xf32>,
    return
  }
  func.func @transform_0(%arg0: i32) -> (i32, i32) {
    %c0_i32 = arith.constant 0 : i32
    %c0_i32_0 = arith.constant 0 : i32
    return %arg0, %c0_i32 : i32, i32
  }
  func.func @transform_1(%arg0: i32) -> (i32, i32) {
    %c0_i32 = arith.constant 0 : i32
    %c0_i32_0 = arith.constant 0 : i32
    %c0_i32_1 = arith.constant 0 : i32
    return %c0_i32, %c0_i32_0 : i32, i32
  }
  func.func @transform_2(%arg0: i32) -> (i32, i32) {
    %c0_i32 = arith.constant 0 : i32
    %c0_i32_0 = arith.constant 0 : i32
    %c0_i32_1 = arith.constant 0 : i32
    return %c0_i32, %c0_i32_0 : i32, i32
  }
  func.func @transform_3(%arg0: i32) -> (i32, i32) {
    %c0_i32 = arith.constant 0 : i32
    %c0_i32_0 = arith.constant 0 : i32
    %c0_i32_1 = arith.constant 0 : i32
    return %c0_i32, %c0_i32_0 : i32, i32
  }
  func.func @transform_4(%arg0: i32) -> (i32, i32) {
    %c0_i32 = arith.constant 0 : i32
    %c0_i32_0 = arith.constant 0 : i32
    %c0_i32_1 = arith.constant 0 : i32
    return %c0_i32, %c0_i32_0 : i32, i32
  }
  func.func @transform_5(%arg0: i32) -> (i32, i32) {
    %c0_i32 = arith.constant 0 : i32
    %c0_i32_0 = arith.constant 0 : i32
    %c0_i32_1 = arith.constant 0 : i32
    return %c0_i32, %c0_i32_0 : i32, i32
  }
  func.func @transform_6(%arg0: i32) -> (i32, i32) {
    %c0_i32 = arith.constant 0 : i32
    %c0_i32_0 = arith.constant 0 : i32
    %c0_i32_1 = arith.constant 0 : i32
    return %c0_i32, %c0_i32_0 : i32, i32
  }
  func.func @transform_7(%arg0: i32) -> (i32, i32) {
    %c0_i32 = arith.constant 0 : i32
    %c0_i32_0 = arith.constant 0 : i32
    return %arg0, %c0_i32 : i32, i32
  }
}

</mosaic_0001>

<bundles_post_ra>
// kernel: tpu_custom_call.1
= control target key start
LH: loop header
LB: loop body
LE: loop exit
PB: predicated region body
PF: predicated region fallthrough
CT: control target
= control target key end

     0   :  { %s419_s0 = inlined_call_operand.vmem [shape: f32[8,2], index: 0, kind: input, shape index: {}]   ;;  %s420_s1 = inlined_call_operand.vmem [shape: f32[2,128], index: 1, kind: input, shape index: {}]   ;;  %s421_s2 = inlined_call_operand.vmem [shape: f32[1,128], index: 2, kind: input, shape index: {}]   ;;  %s422_s3 = inlined_call_operand.hbm [shape: bf16[128,256], index: 3, kind: input, shape index: {}]   ;;  %s423_s4 = inlined_call_operand.vmem [shape: f32[1,256], index: 4, kind: input, shape index: {}]   ;;  %s424_s5 = inlined_call_operand.vmem [shape: f32[1,256], index: 5, kind: input, shape index: {}]   ;;  %s425_s6 = inlined_call_operand.<no memory space> [shape: f32[1,1], index: 6, kind: input, shape index: {}]   ;;  %s426_s7 = inlined_call_operand.vmem [shape: f32[8,1], index: 7, kind: output, shape index: {}]  }
   0x1   :  { %v12_v0 = vstv %s425_s6 }
   0x2   :  { %13 = vst [vmem:[#allocation2] sm:$0x1] %v12_v0 }
   0x3   :  { %14 = vsyncpa [#allocation4], 0  ;;  %s347_s26 = smov [#allocation3]  }
   0x4   :  { %s26_s27 = sshll.u32 %s347_s26, 4  ;;  %s27_s27 = int_to_ptr.vmem [resolvable:$true] %s26_s27 }
   0x5   :  { %s333_s28 = scalar_lea.vmem %s27_s27, 2048  ;;  %p338_p1 = scmp.lt.s32.totalorder %s27_s27, %s27_s27 }
   0x6   :  { %p334_p0 = scmp.ne.s32.totalorder %s27_s27, %s333_s28  ;;  %p339_p2 = scmp.lt.s32.totalorder %s333_s28, %s333_s28 }
   0x8   :  { %p340_p3 = por %p339_p2, %p338_p1 }
   0xa   :  { %p341_p4 = pnand %p340_p3, %p334_p0 }
   0xc   :  { %344 = shalt.err (!%p341_p4)
}
   0xd   :  { %s348_s29 = smov 128   ;;  %s349_s30 = smov 8  }
   0xe   :  { %32 = dma.hbm_to_vmem [thread:$0]  %s422_s3, 2048, %s27_s27, [#allocation4], %s348_s29, %s348_s29, %s349_s30  }
   0xf   :  { %345 = dma.done.wait [#allocation4], 2048  }
  0x10   :  { %346 = vsyncadd [#allocation4], 4294965248  ;;  %v350_v1 = vmov 0   ;;  %v43_v2 = vld [vmem:[%s419_s0] sm:$0xff]  ;;  %v299_v4 = vld [vmem:[#allocation3 + $0x70] ss:$8 sps:$4 sm:$0xff]   ;;  %v96_v32 = vlaneseq }
  0x11   :  { %295 = vset.pattern.permute.xlu0 %v350_v1  ;;  %218 = vmatprep.mubr.bf16.mxu0 %v350_v1  ;;  %v297_v3 = vld [vmem:[#allocation3 + $0x74] ss:$8 sps:$4 sm:$0xff]   ;;  %v300_v5 = vld [vmem:[#allocation3 + $0x64] ss:$8 sps:$4 sm:$0xff]   ;;  %v302_v6 = vld [vmem:[#allocation3 + $0x60] ss:$8 sps:$4 sm:$0xff]  }
  0x12   :  { %47 = vperm.xlu0 %295, %v43_v2   ;;  %186 = vmatprep.subr.bf16.mxu0 %v297_v3  ;;  %v351_v7 = vmov 1   ;;  %v303_v8 = vld [vmem:[#allocation3 + $0x54] ss:$8 sps:$4 sm:$0xff]   ;;  %v305_v9 = vld [vmem:[#allocation3 + $0x50] ss:$8 sps:$4 sm:$0xff]   ;;  %v97_v33 = vshrl.u32 %v96_v32, 7 }
  0x13   :  { %187 = vmatpush1.bf16.msra.mxu0 %v299_v4  ;;  %v306_v10 = vld [vmem:[#allocation3 + $0x44] ss:$8 sps:$4 sm:$0xff]   ;;  %v308_v11 = vld [vmem:[#allocation3 + $0x40] ss:$8 sps:$4 sm:$0xff]   ;;  %v309_v12 = vld [vmem:[#allocation3 + $0x34] ss:$8 sps:$4 sm:$0xff]  }
  0x14   :  { %188 = vmatprep.subr.bf16.mxu0 %v300_v5  ;;  %v311_v13 = vld [vmem:[#allocation3 + $0x30] ss:$8 sps:$4 sm:$0xff]   ;;  %v312_v14 = vld [vmem:[#allocation3 + $0x24] ss:$8 sps:$4 sm:$0xff]   ;;  %v314_v15 = vld [vmem:[#allocation3 + $0x20] ss:$8 sps:$4 sm:$0xff]  }
  0x15   :  { %v315_v16 = vld [vmem:[#allocation3 + $0x14] ss:$8 sps:$4 sm:$0xff]   ;;  %v317_v17 = vld [vmem:[#allocation3 + $0x10] ss:$8 sps:$4 sm:$0xff]   ;;  %v318_v18 = vld [vmem:[#allocation3 + $0x4] ss:$8 sps:$4 sm:$0xff]  }
  0x16   :  { %296 = vset.pattern.permute.xlu0 %v351_v7  ;;  %v320_v19 = vld [vmem:[#allocation3] ss:$8 sps:$4 sm:$0xff]   ;;  %v270_v21 = vld [vmem:[%s420_s1] ss:$0 sm:$0xff]  ;;  %v98_v34 = vsub.s32 0, %v97_v33  ;;  %v102_v36 = vsub.s32 1, %v97_v33 }
  0x17   :  { %57 = vperm.xlu0 %296, %v43_v2   ;;  %189 = vmatpush1.bf16.msra.mxu0 %v302_v6  ;;  %v271_v22 = vld [vmem:[%s420_s1 + $0x1] ss:$0 sm:$0xff]  ;;  %v272_v26 = vld [vmem:[%s421_s2] ss:$0 sm:$0xff]  ;;  %vm263_vm3 = vcmask 7168  }
  0x18   :  { %190 = vmatprep.subr.bf16.mxu0 %v303_v8  ;;  %v94_v35 = vld [vmem:[%s423_s4] sm:$0x3] }
  0x19   :  { %v99_v37 = vrot.slane %v94_v35, %v98_v34  ;;  %v103_v38 = vrot.slane %v94_v35, %v102_v36  ;;  %v233_v41 = vld [vmem:[%s424_s5] sm:$0x3] }
  0x1a   :  { %v238_v46 = vrot.slane %v233_v41, %v98_v34  ;;  %v242_v47 = vrot.slane %v233_v41, %v102_v36  ;;  %v289_v55 = vld [vmem:[#allocation2] ss:$0 sm:$0xff] }
  0x1b   :  { %191 = vmatpush1.bf16.msra.mxu0 %v305_v9 }
  0x1c   :  { %192 = vmatprep.subr.bf16.mxu0 %v306_v10 }
  0x1f   :  { %193 = vmatpush1.bf16.msra.mxu0 %v308_v11 }
  0x20   :  { %194 = vmatprep.subr.bf16.mxu0 %v309_v12 }
  0x23   :  { %195 = vmatpush1.bf16.msra.mxu0 %v311_v13 }
  0x24   :  { %196 = vmatprep.subr.bf16.mxu0 %v312_v14 }
  0x27   :  { %197 = vmatpush1.bf16.msra.mxu0 %v314_v15 }
  0x28   :  { %198 = vmatprep.subr.bf16.mxu0 %v315_v16 }
  0x2b   :  { %199 = vmatpush1.bf16.msra.mxu0 %v317_v17 }
  0x2c   :  { %200 = vmatprep.subr.bf16.mxu0 %v318_v18 }
  0x2f   :  { %201 = vmatpush1.bf16.msra.mxu0 %v320_v19 }
  0x8d   :  { %v48_v20 = vpop.permute.xlu0 %47 }
  0x8e   :  { %v54_v24 = vmul.f32 %v270_v21, %v48_v20 }
  0x92   :  { %v58_v23 = vpop.permute.xlu0 %57 }
  0x93   :  { %v64_v25 = vmul.f32 %v271_v22, %v58_v23 }
  0x95   :  { %v65_v27 = vadd.f32 %v64_v25, %v54_v24 }
  0x97   :  { %v73_v28 = vadd.f32 %v272_v26, %v65_v27 }
  0x99   :  { %vm74_vm0 = vcmp.gt.f32.partialorder %v73_v28, 0.0  ;;  %v75_v29 = vmul.f32 0.2, %v73_v28 }
  0x9b   :  { %v76_v30 = vsel %vm74_vm0, %v73_v28, %v75_v29 }
  0x9c   :  { %v77_v31 = vpack.c.bf16 %v76_v30, %v76_v30 }
  0x9e   :  { %219 = vmatmul.mubr.bf16.vlgmr.msra.gmra.mxu0 %v77_v31 }
 0x15e   :  { %v220_v39 = vpop.f32.mrf.mxu0 }
 0x15f   :  { %v221_v40 = vadd.f32 %v220_v39, %v99_v37 }
 0x160   :  { %v222_v42 = vpop.f32.mrf.mxu0 }
 0x161   :  { %vm227_vm1 = vcmp.gt.f32.partialorder %v221_v40, 0.0  ;;  %v229_v43 = vmul.f32 0.2, %v221_v40  ;;  %v223_v44 = vadd.f32 %v222_v42, %v103_v38 }
 0x162   :  { %v224_v45 = vpop.f32.mrf.mxu0 }
 0x163   :  { %vm228_vm2 = vcmp.gt.f32.partialorder %v223_v44, 0.0  ;;  %v230_v48 = vmul.f32 0.2, %v223_v44  ;;  %v231_v49 = vsel %vm227_vm1, %v221_v40, %v229_v43 }
 0x164   :  { %v225_v50 = vpop.f32.mrf.mxu0  ;;  %v245_v52 = vmul.f32 %v238_v46, %v231_v49 }
 0x165   :  { %v232_v51 = vsel %vm228_vm2, %v223_v44, %v230_v48 }
 0x166   :  { %v246_v53 = vmul.f32 %v242_v47, %v232_v51 }
 0x168   :  { %v247_v54 = vadd.f32 %v246_v53, %v245_v52 }
 0x16a   :  { %248 = vadd.xlane.f32.xlu1 %v247_v54 }
 0x1f3   :  { %v249_v56 = vpop.xlane.xlu1 %248 }
 0x1f4   :  { %v257_v57 = vadd.f32 %v289_v55, %v249_v56 }
 0x1f6   :  { %v258_v58 = vsub.f32 0.0, %v257_v57 }
 0x1f8   :  { %v259_v59 = vmul.f32 1.442695, %v258_v58 }
 0x1fa   :  { %321 = vpow2.f32 %v259_v59 }
 0x207   :  { %v322_v60 = vpop.eup %321 }
 0x208   :  { %v261_v61 = vadd.f32 1.0, %v322_v60 }
 0x20a   :  { %323 = vrcp.f32 %v261_v61 }
 0x217   :  { %v324_v62 = vpop.eup %323 }
 0x218   :  { %264 = vst.msk [vmem:[%s426_s7] sm:$0xff] %vm263_vm3, %v324_v62 }
 0x219   :  { %269 = vsyncpa [#allocation4], 1 }

</bundles_post_ra>
